<compile_context>
chip_gen: v6e
topology: v6e:2x2x1
jax: 0.10.0
libtpu: 0.0.40
codegen_flags: <defaults>
</compile_context>

<pallas_src>
import functools

import jax
import jax.numpy as jnp
from jax.experimental import pallas as pl
from jax.experimental.pallas import tpu as pltpu

LANE = 128
MAX_LANE_CHUNKS = 64          # bounds the static unroll of the per-tile accumulation
                              # (=> s_tile <= 8192)


# ----------------------------------------------------------------------------
# Shared accumulation / finalize helpers (trace-time static flags).
# ----------------------------------------------------------------------------
def _accumulate_tile(x_ref, sum_acc, max_acc, *, s_tile, lane_acc):
    """Accumulate one (.., Ct, s_tile) tile into the scratch accumulators.

    lane_acc=True: accumulators are lane-shaped (.., Ct, 128); updates are pure
    VPU add/max over static 128-lane chunks (no XLU reduce in the steady state).
    lane_acc=False (only when s_tile == S and S % 128 != 0, i.e. a single grid
    step): do the cross-lane reduce directly -- it happens exactly once.
    """
    if lane_acc:
        n_chunks = s_tile // LANE
        for j in range(n_chunks):                     # static unroll (<= MAX_LANE_CHUNKS)
            xj = x_ref[:, :, j * LANE:(j + 1) * LANE].astype(jnp.float32)
            sum_acc[...] = sum_acc[...] + xj
            max_acc[...] = jnp.maximum(max_acc[...], xj)
    else:
        x = x_ref[...].astype(jnp.float32)
        sum_acc[...] = sum_acc[...] + jnp.sum(x, axis=-1)
        max_acc[...] = jnp.maximum(max_acc[...], jnp.max(x, axis=-1))


def _finalize_pool(sum_acc, max_acc, *, inv_area, lane_acc):
    """Collapse accumulators to (.., Ct) avg / max.  The only XLU reduce."""
    if lane_acc:
        avg = jnp.sum(sum_acc[...], axis=-1) * inv_area
        mx = jnp.max(max_acc[...], axis=-1)
    else:
        avg = sum_acc[...] * inv_area
        mx = max_acc[...]
    return avg, mx


def _mlp_sigmoid(avg, mx, w1_ref, w2_ref, out_dtype):
    """sigmoid(fc2(relu(fc1(avg))) + fc2(relu(fc1(mx)))) with fc2 run once."""
    w1 = w1_ref[...].astype(jnp.float32)
    w2 = w2_ref[...].astype(jnp.float32)
    h = (jnp.maximum(jnp.dot(avg, w1, preferred_element_type=jnp.float32), 0.0)
         + jnp.maximum(jnp.dot(mx, w1, preferred_element_type=jnp.float32), 0.0))
    logits = jnp.dot(h, w2, preferred_element_type=jnp.float32)
    return (1.0 / (1.0 + jnp.exp(-logits))).astype(out_dtype)


# ----------------------------------------------------------------------------
# Fused kernel: pooling + MLP + sigmoid (used when c_tile == C).
# Grid = (B, S_tiles); blocks: x (1, C, s_tile), out (1, 1, C).
# ----------------------------------------------------------------------------
def _fused_kernel(x_ref, w1_ref, w2_ref, o_ref, sum_acc, max_acc, *,
                  inv_area, s_tile, lane_acc):
    si = pl.program_id(1)

    @pl.when(si == 0)
    def _():
        sum_acc[...] = jnp.zeros_like(sum_acc)
        max_acc[...] = jnp.full_like(max_acc, -jnp.inf)

    _accumulate_tile(x_ref, sum_acc, max_acc, s_tile=s_tile, lane_acc=lane_acc)

    @pl.when(si == pl.num_programs(1) - 1)
    def _():
        avg, mx = _finalize_pool(sum_acc, max_acc, inv_area=inv_area,
                                 lane_acc=lane_acc)                      # (1, C)
        o_ref[0] = _mlp_sigmoid(avg, mx, w1_ref, w2_ref, o_ref.dtype)    # (1, C)


# ----------------------------------------------------------------------------
# Fallback path (C tiled): pooling kernel + separate tiny MLP kernel.
# ----------------------------------------------------------------------------
def _pool_kernel(x_ref, avg_ref, max_ref, sum_acc, max_acc, *,
                 inv_area, s_tile, lane_acc):
    si = pl.program_id(1)

    @pl.when(si == 0)
    def _():
        sum_acc[...] = jnp.zeros_like(sum_acc)
        max_acc[...] = jnp.full_like(max_acc, -jnp.inf)

    _accumulate_tile(x_ref, sum_acc, max_acc, s_tile=s_tile, lane_acc=lane_acc)

    @pl.when(si == pl.num_programs(1) - 1)
    def _():
        avg, mx = _finalize_pool(sum_acc, max_acc, inv_area=inv_area,
                                 lane_acc=lane_acc)
        avg_ref[...] = avg
        max_ref[...] = mx


def _mlp_kernel(avg_ref, max_ref, w1_ref, w2_ref, o_ref):
    o_ref[...] = _mlp_sigmoid(avg_ref[...], max_ref[...], w1_ref, w2_ref,
                              o_ref.dtype)


# ----------------------------------------------------------------------------
# Tile selection
# ----------------------------------------------------------------------------
def _pick_s_tile(S, max_elems):
    """Prefer the full spatial extent; otherwise the largest 128-multiple
    divisor of S that fits the per-buffer element budget (and the unroll cap)."""
    max_elems = min(max_elems, MAX_LANE_CHUNKS * LANE)
    if S <= max_elems or S % LANE != 0:
        # Full-extent blocks are always layout-legal.  (If S is both huge and
        # not a multiple of 128 this may exceed the budget; such shapes are
        # rare for CBAM.)  # TODO(synk): element-indexed tail tiling for that case.
        return S
    t = max(LANE, min((max_elems // LANE) * LANE, S))
    while S % t != 0:
        t -= LANE
    return t


def _pick_c_tile(C, B, S, itemsize, per_buffer_bytes):
    """Full C (enables MLP fusion) unless even a 128-wide S tile would blow the
    per-buffer budget; then fall back to 128-aligned C tiles."""
    if C % 128 == 0 and B * C * min(S, LANE) * itemsize > per_buffer_bytes:
        max_c = max(128, per_buffer_bytes // (B * min(S, LANE) * itemsize))
        best = 128
        t = 128
        while t <= min(C, max_c):
            if C % t == 0:
                best = t
            t += 128
        return best
    return C


# ----------------------------------------------------------------------------
# Wrapper
# ----------------------------------------------------------------------------
def channel_attention_2d(x, w1, w2, *, c_tile=None, s_tile=None,
                         per_buffer_bytes=None, interpret=False):
    """x: (B, C, H, W); w1: (C, C//ratio); w2: (C//ratio, C).
    Returns sigmoid channel-attention weights of shape (B, C, 1, 1)."""
    B, C, H, W = x.shape
    Cin, Cr = w1.shape
    assert Cin == C and w2.shape == (Cr, C)
    S = H * W
    x3 = x.reshape(B, C, S)
    itemsize = jnp.dtype(x.dtype).itemsize
    inv_area = 1.0 / float(S)

    # --- generation-aware VMEM budgeting (v5e/v6e: 128 MiB, v7x: 64 MiB) -----
    try:
        vmem_cap = int(pltpu.get_tpu_info().vmem_capacity_bytes)
    except Exception:
        vmem_cap = 64 * 1024 * 1024                    # conservative (v7x) fallback
    if per_buffer_bytes is None:
        # budget for ONE x tile; the pipeline double-buffers it.
        per_buffer_bytes = min(12 * 1024 * 1024, vmem_cap // 8)
    vmem_limit = int(min(vmem_cap // 2, 64 * 1024 * 1024))

    # --- tile selection (dtype-aware, prefer full S, full C when possible) ---
    if c_tile is None:
        c_tile = _pick_c_tile(C, B, S, itemsize, per_buffer_bytes)
    assert C % c_tile == 0
    fused = (c_tile == C)
    b_block = 1 if fused else B

    if s_tile is None:
        max_elems = max(LANE, per_buffer_bytes // (itemsize * b_block * c_tile))
        s_tile = _pick_s_tile(S, max_elems)
    assert s_tile == S or (S % s_tile == 0 and s_tile % LANE == 0)
    lane_acc = (s_tile % LANE == 0)
    n_s = max(1, S // s_tile)

    compiler_params = pltpu.CompilerParams(
        dimension_semantics=("parallel", "arbitrary"),
        vmem_limit_bytes=vmem_limit,
    )
    acc_shape = (b_block, c_tile, LANE) if lane_acc else (b_block, c_tile)

    if fused:
        # Single kernel: pooling + MLP + sigmoid.  B is a parallel grid axis
        # (block 1) so v7x's two TensorCores both get work; S is the reduction.
        out = pl.pallas_call(
            functools.partial(_fused_kernel, inv_area=inv_area,
                              s_tile=s_tile, lane_acc=lane_acc),
            out_shape=jax.ShapeDtypeStruct((B, 1, C), x.dtype),
            grid_spec=pltpu.PrefetchScalarGridSpec(
                num_scalar_prefetch=0,
                grid=(B, n_s),
                in_specs=[
                    pl.BlockSpec((1, C, s_tile), lambda b, si: (b, 0, si)),
                    pl.BlockSpec((C, Cr), lambda b, si: (0, 0)),   # fetched once
                    pl.BlockSpec((Cr, C), lambda b, si: (0, 0)),   # fetched once
                ],
                out_specs=pl.BlockSpec((1, 1, C), lambda b, si: (b, 0, 0)),
                scratch_shapes=[
                    pltpu.VMEM(acc_shape, jnp.float32),
                    pltpu.VMEM(acc_shape, jnp.float32),
                ],
            ),
            compiler_params=compiler_params,
            interpret=interpret,
        )(x3, w1, w2)
        return out.reshape(B, C, 1, 1)

    # ----- fallback: C tiled -> separate pooling + MLP kernels --------------
    avg_pooled, max_pooled = pl.pallas_call(
        functools.partial(_pool_kernel, inv_area=inv_area,
                          s_tile=s_tile, lane_acc=lane_acc),
        out_shape=(
            jax.ShapeDtypeStruct((B, C), jnp.float32),
            jax.ShapeDtypeStruct((B, C), jnp.float32),
        ),
        grid_spec=pltpu.PrefetchScalarGridSpec(
            num_scalar_prefetch=0,
            grid=(C // c_tile, n_s),
            in_specs=[
                pl.BlockSpec((B, c_tile, s_tile), lambda ci, si: (0, ci, si)),
            ],
            out_specs=[
                pl.BlockSpec((B, c_tile), lambda ci, si: (0, ci)),
                pl.BlockSpec((B, c_tile), lambda ci, si: (0, ci)),
            ],
            scratch_shapes=[
                pltpu.VMEM(acc_shape, jnp.float32),
                pltpu.VMEM(acc_shape, jnp.float32),
            ],
        ),
        compiler_params=compiler_params,
        interpret=interpret,
    )(x3)

    attn = pl.pallas_call(
        _mlp_kernel,
        out_shape=jax.ShapeDtypeStruct((B, C), x.dtype),
        in_specs=[pl.BlockSpec(memory_space=pltpu.MemorySpace.VMEM)] * 4,
        out_specs=pl.BlockSpec(memory_space=pltpu.MemorySpace.VMEM),
        interpret=interpret,
    )(avg_pooled, max_pooled, w1, w2)
    return attn.reshape(B, C, 1, 1)


# ----------------------------------------------------------------------------
# Reference + self-test
# ----------------------------------------------------------------------------
def _reference(x, w1, w2):
    avg_p = x.mean(axis=(2, 3))
    max_p = x.max(axis=(2, 3))

    def mlp(v):
        return jnp.maximum(v @ w1, 0.0) @ w2

    out = 1.0 / (1.0 + jnp.exp(-(mlp(avg_p) + mlp(max_p))))
    return out[:, :, None, None]


if __name__ == "__main__":
    key = jax.random.PRNGKey(0)
    kx, k1, k2, kx2, k3, k4 = jax.random.split(key, 6)

    # Config 1: default fused path (full-S tile, MLP fused into pooling kernel).
    B, C, H, W, ratio = 2, 64, 16, 16, 16
    Cr = C // ratio
    x = jax.random.normal(kx, (B, C, H, W), dtype=jnp.float32)
    w1 = jax.random.normal(k1, (C, Cr), dtype=jnp.float32) * (1.0 / (C ** 0.5))
    w2 = jax.random.normal(k2, (Cr, C), dtype=jnp.float32) * (1.0 / (Cr ** 0.5))

    ref = _reference(x, w1, w2)
    y = jax.block_until_ready(channel_attention_2d(x, w1, w2))
    assert y.shape == (B, C, 1, 1)
    assert jnp.allclose(y, ref, atol=1e-5, rtol=1e-5)

    # Config 2: fused path with forced multi-step S reduction (lane accumulators).
    y2 = jax.block_until_ready(channel_attention_2d(x, w1, w2, s_tile=128))
    assert jnp.allclose(y2, ref, atol=1e-5, rtol=1e-5)

    # Config 3: C-tiled fallback path (separate pooling + MLP kernels).
    B3, C3, H3, W3, r3 = 2, 256, 16, 16, 16
    Cr3 = C3 // r3
    xb = jax.random.normal(kx2, (B3, C3, H3, W3), dtype=jnp.float32)
    w1b = jax.random.normal(k3, (C3, Cr3), dtype=jnp.float32) * (1.0 / (C3 ** 0.5))
    w2b = jax.random.normal(k4, (Cr3, C3), dtype=jnp.float32) * (1.0 / (Cr3 ** 0.5))
    y3 = jax.block_until_ready(
        channel_attention_2d(xb, w1b, w2b, c_tile=128, s_tile=128))
    assert jnp.allclose(y3, _reference(xb, w1b, w2b), atol=1e-5, rtol=1e-5)

    print("KERNEL_OK")
</pallas_src>

<mosaic_0001>
module attributes {stable_mosaic.version = 11 : i64} {
  func.func @_fused_kernel(%arg0: i32, %arg1: i32, %arg2: memref<1x64x256xf32, #tpu.memory_space<vmem>>, %arg3: memref<64x4xf32, #tpu.memory_space<vmem>>, %arg4: memref<4x64xf32, #tpu.memory_space<vmem>>, %arg5: memref<1x1x64xf32, #tpu.memory_space<vmem>>, %arg6: memref<1x64x128xf32, #tpu.memory_space<vmem>>, %arg7: memref<1x64x128xf32, #tpu.memory_space<vmem>>) attributes {dimension_semantics = [#tpu.dimension_semantics<parallel>, #tpu.dimension_semantics<arbitrary>], iteration_bounds = array<i64: 2, 1>, scalar_prefetch = 0 : i64, scratch_operands = 2 : i64, tpu.core_type = #tpu.core_type<tc>, window_params = [{transform_indices = @transform_0, window_bounds = array<i64: 1, 64, 256>}, {pipeline_mode = #tpu.pipeline_mode<synchronous>, transform_indices = @transform_1, window_bounds = array<i64: 64, 4>}, {pipeline_mode = #tpu.pipeline_mode<synchronous>, transform_indices = @transform_2, window_bounds = array<i64: 4, 64>}, {transform_indices = @transform_3, window_bounds = array<i64: 1, 1, 64>}]} {
    %c0_i32 = arith.constant 0 : i32
    %0 = arith.cmpi eq, %arg1, %c0_i32 : i32
    %1 = arith.extui %0 : i1 to i32
    %c0_i32_0 = arith.constant 0 : i32
    %2 = arith.cmpi ne, %1, %c0_i32_0 : i32
    scf.if %2 {
      %cst = arith.constant 0.000000e+00 : f32
      %20 = vector.broadcast %cst : f32 to vector<1x64x128xf32>
      %c0_31 = arith.constant 0 : index
      %c0_32 = arith.constant 0 : index
      %c0_33 = arith.constant 0 : index
      %21 = vector.load %arg6[%c0_31, %c0_32, %c0_33] : memref<1x64x128xf32, #tpu.memory_space<vmem>>, vector<1x64x128xf32>
      tpu.vector_store %arg6[%c0_31, %c0_32, %c0_33], %20 {strides = array<i32>} : memref<1x64x128xf32, #tpu.memory_space<vmem>>, vector<1x64x128xf32>,
      %cst_34 = arith.constant 0xFF800000 : f32
      %22 = vector.broadcast %cst_34 : f32 to vector<1x64x128xf32>
      %c0_35 = arith.constant 0 : index
      %c0_36 = arith.constant 0 : index
      %c0_37 = arith.constant 0 : index
      %23 = vector.load %arg7[%c0_35, %c0_36, %c0_37] : memref<1x64x128xf32, #tpu.memory_space<vmem>>, vector<1x64x128xf32>
      tpu.vector_store %arg7[%c0_35, %c0_36, %c0_37], %22 {strides = array<i32>} : memref<1x64x128xf32, #tpu.memory_space<vmem>>, vector<1x64x128xf32>,
    } else {
    }
    %c0 = arith.constant 0 : index
    %c0_1 = arith.constant 0 : index
    %c0_2 = arith.constant 0 : index
    %3 = vector.load %arg2[%c0, %c0_1, %c0_2] : memref<1x64x256xf32, #tpu.memory_space<vmem>>, vector<1x64x128xf32>
    %c0_3 = arith.constant 0 : index
    %c0_4 = arith.constant 0 : index
    %c0_5 = arith.constant 0 : index
    %4 = vector.load %arg6[%c0_3, %c0_4, %c0_5] : memref<1x64x128xf32, #tpu.memory_space<vmem>>, vector<1x64x128xf32>
    %5 = arith.addf %4, %3 : vector<1x64x128xf32>
    %c0_6 = arith.constant 0 : index
    %c0_7 = arith.constant 0 : index
    %c0_8 = arith.constant 0 : index
    %6 = vector.load %arg6[%c0_6, %c0_7, %c0_8] : memref<1x64x128xf32, #tpu.memory_space<vmem>>, vector<1x64x128xf32>
    tpu.vector_store %arg6[%c0_6, %c0_7, %c0_8], %5 {strides = array<i32>} : memref<1x64x128xf32, #tpu.memory_space<vmem>>, vector<1x64x128xf32>,
    %c0_9 = arith.constant 0 : index
    %c0_10 = arith.constant 0 : index
    %c0_11 = arith.constant 0 : index
    %7 = vector.load %arg7[%c0_9, %c0_10, %c0_11] : memref<1x64x128xf32, #tpu.memory_space<vmem>>, vector<1x64x128xf32>
    %8 = arith.maximumf %7, %3 : vector<1x64x128xf32>
    %c0_12 = arith.constant 0 : index
    %c0_13 = arith.constant 0 : index
    %c0_14 = arith.constant 0 : index
    %9 = vector.load %arg7[%c0_12, %c0_13, %c0_14] : memref<1x64x128xf32, #tpu.memory_space<vmem>>, vector<1x64x128xf32>
    tpu.vector_store %arg7[%c0_12, %c0_13, %c0_14], %8 {strides = array<i32>} : memref<1x64x128xf32, #tpu.memory_space<vmem>>, vector<1x64x128xf32>,
    %c0_15 = arith.constant 0 : index
    %c0_16 = arith.constant 0 : index
    %c128 = arith.constant 128 : index
    %10 = vector.load %arg2[%c0_15, %c0_16, %c128] : memref<1x64x256xf32, #tpu.memory_space<vmem>>, vector<1x64x128xf32>
    %c0_17 = arith.constant 0 : index
    %c0_18 = arith.constant 0 : index
    %c0_19 = arith.constant 0 : index
    %11 = vector.load %arg6[%c0_17, %c0_18, %c0_19] : memref<1x64x128xf32, #tpu.memory_space<vmem>>, vector<1x64x128xf32>
    %12 = arith.addf %11, %10 : vector<1x64x128xf32>
    %c0_20 = arith.constant 0 : index
    %c0_21 = arith.constant 0 : index
    %c0_22 = arith.constant 0 : index
    %13 = vector.load %arg6[%c0_20, %c0_21, %c0_22] : memref<1x64x128xf32, #tpu.memory_space<vmem>>, vector<1x64x128xf32>
    tpu.vector_store %arg6[%c0_20, %c0_21, %c0_22], %12 {strides = array<i32>} : memref<1x64x128xf32, #tpu.memory_space<vmem>>, vector<1x64x128xf32>,
    %c0_23 = arith.constant 0 : index
    %c0_24 = arith.constant 0 : index
    %c0_25 = arith.constant 0 : index
    %14 = vector.load %arg7[%c0_23, %c0_24, %c0_25] : memref<1x64x128xf32, #tpu.memory_space<vmem>>, vector<1x64x128xf32>
    %15 = arith.maximumf %14, %10 : vector<1x64x128xf32>
    %c0_26 = arith.constant 0 : index
    %c0_27 = arith.constant 0 : index
    %c0_28 = arith.constant 0 : index
    %16 = vector.load %arg7[%c0_26, %c0_27, %c0_28] : memref<1x64x128xf32, #tpu.memory_space<vmem>>, vector<1x64x128xf32>
    tpu.vector_store %arg7[%c0_26, %c0_27, %c0_28], %15 {strides = array<i32>} : memref<1x64x128xf32, #tpu.memory_space<vmem>>, vector<1x64x128xf32>,
    %c0_i32_29 = arith.constant 0 : i32
    %17 = arith.cmpi eq, %arg1, %c0_i32_29 : i32
    %18 = arith.extui %17 : i1 to i32
    %c0_i32_30 = arith.constant 0 : i32
    %19 = arith.cmpi ne, %18, %c0_i32_30 : i32
    scf.if %19 {
      %c0_31 = arith.constant 0 : index
      %c0_32 = arith.constant 0 : index
      %c0_33 = arith.constant 0 : index
      %20 = vector.load %arg6[%c0_31, %c0_32, %c0_33] : memref<1x64x128xf32, #tpu.memory_space<vmem>>, vector<1x64x128xf32>
      %cst = arith.constant dense<0.000000e+00> : vector<1x64xf32>
      %21 = vector.multi_reduction <add>, %20, %cst [2] : vector<1x64x128xf32> to vector<1x64xf32>
      %cst_34 = arith.constant 3.906250e-03 : f32
      %22 = vector.broadcast %cst_34 : f32 to vector<1x64xf32>
      %23 = arith.mulf %21, %22 : vector<1x64xf32>
      %c0_35 = arith.constant 0 : index
      %c0_36 = arith.constant 0 : index
      %c0_37 = arith.constant 0 : index
      %24 = vector.load %arg7[%c0_35, %c0_36, %c0_37] : memref<1x64x128xf32, #tpu.memory_space<vmem>>, vector<1x64x128xf32>
      %cst_38 = arith.constant dense<0xFF800000> : vector<1x64xf32>
      %25 = vector.multi_reduction <maximumf>, %24, %cst_38 [2] : vector<1x64x128xf32> to vector<1x64xf32>
      %c0_39 = arith.constant 0 : index
      %c0_40 = arith.constant 0 : index
      %26 = vector.load %arg3[%c0_39, %c0_40] : memref<64x4xf32, #tpu.memory_space<vmem>>, vector<64x4xf32>
      %c0_41 = arith.constant 0 : index
      %c0_42 = arith.constant 0 : index
      %27 = vector.load %arg4[%c0_41, %c0_42] : memref<4x64xf32, #tpu.memory_space<vmem>>, vector<4x64xf32>
      %cst_43 = arith.constant dense<0.000000e+00> : vector<1x4xf32>
      %28 = tpu.matmul %23, %26, %cst_43 {dimension_numbers = #tpu.dot_dimension_numbers<[1], [0], [0], [1], [0, 0, 1, 1], [], []>} : vector<1x64xf32>, vector<64x4xf32>, vector<1x4xf32> -> vector<1x4xf32>
      %cst_44 = arith.constant 0.000000e+00 : f32
      %29 = vector.broadcast %cst_44 : f32 to vector<1x4xf32>
      %30 = arith.maximumf %28, %29 : vector<1x4xf32>
      %cst_45 = arith.constant dense<0.000000e+00> : vector<1x4xf32>
      %31 = tpu.matmul %25, %26, %cst_45 {dimension_numbers = #tpu.dot_dimension_numbers<[1], [0], [0], [1], [0, 0, 1, 1], [], []>} : vector<1x64xf32>, vector<64x4xf32>, vector<1x4xf32> -> vector<1x4xf32>
      %cst_46 = arith.constant 0.000000e+00 : f32
      %32 = vector.broadcast %cst_46 : f32 to vector<1x4xf32>
      %33 = arith.maximumf %31, %32 : vector<1x4xf32>
      %34 = arith.addf %30, %33 : vector<1x4xf32>
      %cst_47 = arith.constant dense<0.000000e+00> : vector<1x64xf32>
      %35 = tpu.matmul %34, %27, %cst_47 {dimension_numbers = #tpu.dot_dimension_numbers<[1], [0], [0], [1], [0, 0, 1, 1], [], []>} : vector<1x4xf32>, vector<4x64xf32>, vector<1x64xf32> -> vector<1x64xf32>
      %cst_48 = arith.constant 0.000000e+00 : f32
      %36 = vector.broadcast %cst_48 : f32 to vector<1x64xf32>
      %37 = arith.subf %36, %35 : vector<1x64xf32>
      %38 = math.exp %37 : vector<1x64xf32>
      %cst_49 = arith.constant 1.000000e+00 : f32
      %39 = vector.broadcast %cst_49 : f32 to vector<1x64xf32>
      %40 = arith.addf %39, %38 : vector<1x64xf32>
      %cst_50 = arith.constant 1.000000e+00 : f32
      %41 = vector.broadcast %cst_50 : f32 to vector<1x64xf32>
      %42 = arith.divf %41, %40 : vector<1x64xf32>
      %c0_51 = arith.constant 0 : index
      %c0_52 = arith.constant 0 : index
      %c0_53 = arith.constant 0 : index
      %43 = vector.load %arg5[%c0_51, %c0_52, %c0_53] : memref<1x1x64xf32, #tpu.memory_space<vmem>>, vector<1x1x64xf32>
      %44 = vector.shape_cast %43 : vector<1x1x64xf32> to vector<1x64xf32>
      %45 = vector.shape_cast %42 : vector<1x64xf32> to vector<1x1x64xf32>
      tpu.vector_store %arg5[%c0_51, %c0_52, %c0_53], %45 {strides = array<i32>} : memref<1x1x64xf32, #tpu.memory_space<vmem>>, vector<1x1x64xf32>,
    } else {
    }
    return
  }
  func.func @transform_0(%arg0: i32, %arg1: i32) -> (i32, i32, i32) {
    %c0_i32 = arith.constant 0 : i32
    %c0_i32_0 = arith.constant 0 : i32
    return %arg0, %c0_i32, %arg1 : i32, i32, i32
  }
  func.func @transform_1(%arg0: i32, %arg1: i32) -> (i32, i32) {
    %c0_i32 = arith.constant 0 : i32
    %c0_i32_0 = arith.constant 0 : i32
    %c0_i32_1 = arith.constant 0 : i32
    return %c0_i32, %c0_i32_0 : i32, i32
  }
  func.func @transform_2(%arg0: i32, %arg1: i32) -> (i32, i32) {
    %c0_i32 = arith.constant 0 : i32
    %c0_i32_0 = arith.constant 0 : i32
    %c0_i32_1 = arith.constant 0 : i32
    return %c0_i32, %c0_i32_0 : i32, i32
  }
  func.func @transform_3(%arg0: i32, %arg1: i32) -> (i32, i32, i32) {
    %c0_i32 = arith.constant 0 : i32
    %c0_i32_0 = arith.constant 0 : i32
    %c0_i32_1 = arith.constant 0 : i32
    return %arg0, %c0_i32, %c0_i32_0 : i32, i32, i32
  }
}

</mosaic_0001>

<bundles_post_ra>
// kernel: tpu_custom_call.1
= control target key start
LH: loop header
LB: loop body
LE: loop exit
PB: predicated region body
PF: predicated region fallthrough
CT: control target
= control target key end

     0   :  { %8 = vsyncpa [#allocation5], 0  ;;  %s1346_s0 = inlined_call_operand.hbm [shape: f32[2,64,256], index: 0, kind: input, shape index: {}]   ;;  %s1347_s1 = inlined_call_operand.vmem [shape: f32[64,4], index: 1, kind: input, shape index: {}]   ;;  %s1348_s2 = inlined_call_operand.vmem [shape: f32[4,64], index: 2, kind: input, shape index: {}]   ;;  %s1349_s3 = inlined_call_operand.hbm [shape: f32[2,1,64], index: 3, kind: output, shape index: {}]  }
   0x1   :  { %10 = vsyncpa [#allocation5 + $0x1], 0 }
   0x2   :  { %11 = vsyncpa [#allocation6], 0 }
   0x3   :  { %13 = vsyncpa [#allocation6 + $0x1], 0  ;;  %s1125_s12 = smov 0   ;;  %s1127_s13 = smov 0  }
   0x4   :  { %s1129_s14 = smov 0   ;;  %s1131_s15 = smov 0  }
   0x5   :  { %s1133_s16 = smov 0   ;;  %s1135_s17 = smov 0  }
   0x6 LB: > { %s839_s18 = sadd.s32 4294967295, %s1097_s17   ;;  %s840_s19 = sadd.s32 4294967294, %s1097_s17   ;;  %s1097_s17 = sphi %s1135_s17, %s19_s17   ;;  %s1093_s16 = sphi %s1133_s16, %s1360_s16   ;;  %s1089_s15 = sphi %s1131_s15, %s1359_s15   ;;  %s1085_s14 = sphi %s1129_s14, %s1358_s14   ;;  %s1081_s13 = sphi %s1127_s13, %s1357_s13   ;;  %s1077_s12 = sphi %s1125_s12, %s1356_s12  }
   0x7   : > { %s31_s20 = sadd.s32 1, %s1093_s16  ;;  %s40_s21 = sadd.s32 1, %s1085_s14 }
   0x8   : > { %p33_p0 = scmp.ge.s32.totalorder %s31_s20, 2  ;;  %p47_p1 = scmp.ne.s32.totalorder %s1085_s14, %s1081_s13 }
   0x9   : > { %p48_p2 = scmp.eq.s32.totalorder %s1097_s17, 0  ;;  %p53_p3 = scmp.ne.s32.totalorder %s1081_s13, %s1077_s12 }
   0xa   : > { %s1362_s20 = smov (%p33_p0, %s31_s20), 0  ;;  %p54_p5 = scmp.eq.s32.totalorder %s839_s18, 0 }
   0xb   : > { %p1166_p4 = por %p48_p2, %p47_p1  ;;  %s35_s23 = ssub.s32 %s1093_s16, %s1362_s20 }
   0xc   : > { %p119_p6 = scmp.eq.s32.totalorder %s839_s18, 1  ;;  %p38_p7 = scmp.eq.s32.totalorder %s35_s23, 0 }
   0xd   : > { %p1172_p8 = por %p54_p5, %p53_p3  ;;  %p125_p10 = scmp.eq.s32.totalorder %s840_s19, 1 }
   0xe   : > { %p1176_p9 = por %p119_p6, %p47_p1  ;;  %p931_p13 = scmp.lt.s32.totalorder %s1097_s17, 2 }
   0xf   : > { %s1181_s26 = scalar_select %p38_p7, %s1085_s14, %s40_s21  }
  0x10   : > { %p1183_p11 = por %p125_p10, %p53_p3  ;;  %s151_s28 = sand.u32 1, %s1085_s14  }
  0x11   : > { %s843_s29 = sshll.u32 %s151_s28, 7  ;;  %s855_s30 = sshll.u32 %s1093_s16, 11 }
  0x12   : > { %s163_s6 = scalar_lea.hbm %s1346_s0, %s855_s30  ;;  %s155_s7 = scalar_lea.vmem [#allocation4], %s843_s29 }
  0x13   : > { %s164_s8 = sshll.u32 %s155_s7, 4  ;;  %p1196_p0 = pnand %p931_p13, %p1166_p4  ;;  %s165_s8 = int_to_ptr.vmem [resolvable:$true] %s164_s8 }
  0x14   : > { %p846_p1 = scmp.ge.s32.totalorder %s1097_s17, 1  ;;  %s152_s10 = scalar_lea.sflag [#allocation5], %s151_s28 }
  0x15   : > { %p991_p2 = pneg %p1196_p0  ;;  %s1002_s11 = scalar_lea.vmem %s165_s8, 2048 }
  0x16   : > { %p1003_p3 = scmp.ne.s32.totalorder %s165_s8, %s1002_s11  ;;  %s1099_s18 = smov [#allocation4]  }
  0x17   : > { %s1007_s19 = sshll.u32 %s1099_s18, 4  ;;  %s1008_s19 = int_to_ptr.vmem [resolvable:$false] %s1007_s19 }
  0x18   : > { %p1005_p5 = pnand %p1003_p3, %p991_p2  ;;  %s1009_s21 = scalar_lea.vmem %s1008_s19, 4096 }
  0x19   : > { %p1010_p7 = scmp.lt.s32.totalorder %s165_s8, %s1008_s19  ;;  %p1011_p10 = scmp.lt.s32.totalorder %s1009_s21, %s1002_s11 }
  0x1a   : > { %p1006_p6 = pneg %p1005_p5 }
  0x1b   : > { %p1012_p12 = por %p1011_p10, %p1010_p7 }
  0x1d   : > { %p1013_p4 = pnand %p1012_p12, %p1006_p6 }
  0x1f   : > { %1016 = shalt.err (!%p1013_p4)
}
  0x20   : > { %s1100_s22 = smov 256   ;;  %s1101_s23 = smov 16  }
  0x21   : > { %926 = dma.hbm_to_vmem [thread:$0]  (!%p1196_p0), %s163_s6, 2048, %s165_s8, %s152_s10, %s1100_s22, %s1100_s22, %s1101_s23  }
  0x22   : > { %p172_p13 = scmp.lt.s32.totalorder %s1097_s17, 3 }
  0x24   : > { %p173_p2 = pnand %p846_p1, %p172_p13 }
  0x25   : > { %s1209_s28 = sand.u32 (!%p173_p2), 1, %s1081_s13  }
  0x26   : > { %176 = sbr.rel (%p173_p2) target bundleno = 655 (0x28f), region = 32  ;;  %s847_s29 = sshll.u32 (!%p173_p2), %s1209_s28, 7 }
  0x27   : > { %s179_s30 = scalar_lea.sflag (!%p173_p2), [#allocation5], %s1209_s28  ;;  %s1213_s4 = scalar_lea.vmem (!%p173_p2), [#allocation4], %s847_s29 }
  0x2b   : > { %1068 = dma.done.wait (%p1172_p8), %s179_s30, 2048  }
  0x2c   : > { %1070 = vsyncadd (%p1172_p8), %s179_s30, 4294965248  ;;  %v227_v0 = vld [vmem:[%s1213_s4 + $0x20] sm:$0xff]  ;;  %v283_v1 = vld [vmem:[%s1213_s4 + $0x28] sm:$0xff]  ;;  %v1102_v31 = vmov 0.0   ;;  %vm1103_vm0 = vmmov 0   ;;  %v413_v43 = vlaneseq  ;;  %vm424_vm1 = vcmask 130112  }
  0x2d   : > { %v225_v2 = vld [vmem:[%s1213_s4] sm:$0xff]  ;;  %v299_v3 = vadd.f32 %v283_v1, %v227_v0  ;;  %v281_v4 = vld [vmem:[%s1213_s4 + $0x8] sm:$0xff]  ;;  %v228_v5 = vld [vmem:[%s1213_s4 + $0x30] sm:$0xff]  ;;  %v323_v16 = vmax.f32 %v227_v0, %v283_v1  ;;  %876 = vmatprep.subr.mxu0 %v1102_v31  ;;  %895 = vmatprep.subr.mxu1 %v1102_v31  ;;  %vm431_vm2 = vcmask 195712   ;;  %vm438_vm3 = vcmask 261312   ;;  %s852_s6 = sshll.u32 %s1089_s15, 4 }
  0x2e   : > { %v284_v6 = vld [vmem:[%s1213_s4 + $0x38] sm:$0xff]  ;;  %v297_v7 = vadd.f32 %v281_v4, %v225_v2  ;;  %v226_v8 = vld [vmem:[%s1213_s4 + $0x10] sm:$0xff]  ;;  %v321_v13 = vmax.f32 %v225_v2, %v281_v4  ;;  %v229_v14 = vld [vmem:[%s1213_s4 + $0x40] sm:$0xff]  ;;  %892 = vmatprep.mubr.msk.f32.mxu0 %vm1103_vm0, %v1102_v31  ;;  %911 = vmatprep.mubr.msk.f32.mxu1 %vm1103_vm0, %v1102_v31  ;;  %v414_v46 = vand.u32 127, %v413_v43  ;;  %v416_v50 = vshrl.u32 %v413_v43, 7  ;;  %s203_s7 = scalar_lea.vmem [#allocation7], %s1209_s28  ;;  %s1304_s11 = scalar_lea.hbm %s1349_s3, %s852_s6 }
  0x2f   : > { %v282_v9 = vld [vmem:[%s1213_s4 + $0x18] sm:$0xff]  ;;  %352 = vadd.xlane.f32.xlu1 %v299_v3  ;;  %v300_v10 = vadd.f32 %v284_v6, %v228_v5  ;;  %v285_v15 = vld [vmem:[%s1213_s4 + $0x48] sm:$0xff]  ;;  %v230_v18 = vld [vmem:[%s1213_s4 + $0x50] sm:$0xff]  ;;  %v324_v20 = vmax.f32 %v228_v5, %v284_v6  ;;  %vm445_vm4 = vcmask 326912   ;;  %vm452_vm5 = vcmask 392512   ;;  %s762_s8 = sshll.u32 %s203_s7, 4  ;;  %s763_s8 = int_to_ptr.vmem [resolvable:$true] %s762_s8 }
  0x30   : > { %348 = vadd.xlane.f32.xlu0 %v297_v7  ;;  %v298_v11 = vadd.f32 %v282_v9, %v226_v8  ;;  %v322_v12 = vmax.f32 %v226_v8, %v282_v9  ;;  %v301_v17 = vadd.f32 %v285_v15, %v229_v14  ;;  %v286_v19 = vld [vmem:[%s1213_s4 + $0x58] sm:$0xff]  ;;  %v231_v22 = vld [vmem:[%s1213_s4 + $0x60] sm:$0xff]  ;;  %v287_v23 = vld [vmem:[%s1213_s4 + $0x68] sm:$0xff]  ;;  %v325_v24 = vmax.f32 %v229_v14, %v285_v15  ;;  %s750_s18 = scalar_lea.sflag [#allocation6], %s1209_s28  ;;  %s1017_s19 = scalar_lea.vmem %s763_s8, 16 }
  0x31   : > { %v302_v21 = vadd.f32 %v286_v19, %v230_v18  ;;  %v303_v25 = vadd.f32 %v287_v23, %v231_v22  ;;  %v232_v26 = vld [vmem:[%s1213_s4 + $0x70] sm:$0xff]  ;;  %v288_v27 = vld [vmem:[%s1213_s4 + $0x78] sm:$0xff]  ;;  %v326_v28 = vmax.f32 %v230_v18, %v286_v19  ;;  %v327_v33 = vmax.f32 %v231_v22, %v287_v23  ;;  %v401_v35 = vld [vmem:[%s1347_s1 + $0x28] sm:$0xff]  ;;  %p1018_p8 = scmp.ne.s32.totalorder %s763_s8, %s1017_s19  ;;  %s1104_s21 = smov [#allocation7]  }
  0x32   : > { %v304_v29 = vadd.f32 %v288_v27, %v232_v26  ;;  %v328_v30 = vmax.f32 %v232_v26, %v288_v27  ;;  %v403_v32 = vld [vmem:[%s1347_s1 + $0x38] sm:$0xff]  ;;  %v402_v34 = vld [vmem:[%s1347_s1 + $0x30] sm:$0xff]  ;;  %v400_v36 = vld [vmem:[%s1347_s1 + $0x20] sm:$0xff]  ;;  %v419_v47 = vadd.s32 4294967288, %v414_v46  ;;  %v426_v54 = vadd.s32 4294967280, %v414_v46  ;;  %s1021_s22 = sshll.u32 %s1104_s21, 4  ;;  %s1022_s22 = int_to_ptr.vmem [resolvable:$false] %s1021_s22 }
  0x33   : > { %354 = vadd.xlane.f32.xlu1 %v300_v10  ;;  %877 = vmatpush3.msra.mxu0 %v403_v32  ;;  %v399_v37 = vld [vmem:[%s1347_s1 + $0x18] sm:$0xff]  ;;  %v398_v38 = vld [vmem:[%s1347_s1 + $0x10] sm:$0xff]  ;;  %v397_v39 = vld [vmem:[%s1347_s1 + $0x8] sm:$0xff]  ;;  %v417_v56 = vsub.s32 %v414_v46, %v416_v50  ;;  %v433_v58 = vadd.s32 4294967272, %v414_v46  ;;  %v440_v59 = vadd.s32 4294967264, %v414_v46  ;;  %v447_v62 = vadd.s32 4294967256, %v414_v46  ;;  %p1019_p12 = pnand %p1018_p8, %p1176_p9  ;;  %p1024_p1 = scmp.lt.s32.totalorder %s763_s8, %s1022_s22 }
  0x34   : > { %350 = vadd.xlane.f32.xlu0 %v298_v11  ;;  %878 = vmatprep.subr.mxu0 %v1102_v31  ;;  %v396_v40 = vld [vmem:[%s1347_s1] sm:$0xff]  ;;  %v422_v51 = vsub.s32 %v419_v47, %v416_v50  ;;  %v429_v63 = vsub.s32 %v426_v54, %v416_v50  ;;  %v454_v2 = vadd.s32 4294967248, %v414_v46  ;;  %vm459_vm6 = vcmask 458112   ;;  %s1023_s15 = scalar_lea.vmem %s1022_s22, 32 }
  0x35   : > { %879 = vmatpush3.msra.mxu0 %v402_v34  ;;  %896 = vmatpush3.msra.mxu1 %v403_v32  ;;  %v436_v4 = vsub.s32 %v433_v58, %v416_v50  ;;  %v443_v6 = vsub.s32 %v440_v59, %v416_v50  ;;  %v450_v9 = vsub.s32 %v447_v62, %v416_v50  ;;  %vm466_vm7 = vcmask 523712   ;;  %p1020_p0 = pneg %p1019_p12  ;;  %p1025_p3 = scmp.lt.s32.totalorder %s1023_s15, %s1017_s19 }
  0x36   : > { %880 = vmatprep.subr.mxu0 %v1102_v31  ;;  %897 = vmatprep.subr.mxu1 %v1102_v31  ;;  %v457_v14 = vsub.s32 %v454_v2, %v416_v50  ;;  %vm468_vm8 = vcmask 523264   ;;  %vm667_vm9 = vcmask 1043456   ;;  %vm663_vm10 = vcmask 31744  }
  0x37   : > { %382 = vmax.xlane.f32.xlu1 %v322_v12  ;;  %881 = vmatpush3.msra.mxu0 %v401_v35  ;;  %v461_v12 = vadd.s32 4294967240, %v414_v46  ;;  %vm747_vm11 = vcmask 516096   ;;  %p1026_p5 = por %p1025_p3, %p1024_p1 }
  0x38   : > { %380 = vmax.xlane.f32.xlu0 %v321_v13  ;;  %882 = vmatprep.subr.mxu0 %v1102_v31 }
  0x39   : > { %898 = vmatpush3.msra.mxu1 %v402_v34  ;;  %883 = vmatpush3.msra.mxu0 %v400_v36  ;;  %p1027_p6 = pnand %p1026_p5, %p1020_p0 }
  0x3a   : > { %899 = vmatprep.subr.mxu1 %v1102_v31  ;;  %884 = vmatprep.subr.mxu0 %v1102_v31 }
  0x3b   : > { %384 = vmax.xlane.f32.xlu1 %v323_v16  ;;  %900 = vmatpush3.msra.mxu1 %v401_v35 }
  0x3c   : > { %356 = vadd.xlane.f32.xlu0 %v301_v17  ;;  %885 = vmatpush3.msra.mxu0 %v399_v37 }
  0x3d   : > { %901 = vmatprep.subr.mxu1 %v1102_v31  ;;  %886 = vmatprep.subr.mxu0 %v1102_v31 }
  0x3e   : > { %902 = vmatpush3.msra.mxu1 %v400_v36  ;;  %887 = vmatpush3.msra.mxu0 %v398_v38 }
  0x3f   : > { %386 = vmax.xlane.f32.xlu1 %v324_v20  ;;  %903 = vmatprep.subr.mxu1 %v1102_v31 }
  0x40   : > { %358 = vadd.xlane.f32.xlu0 %v302_v21  ;;  %888 = vmatprep.subr.mxu0 %v1102_v31 }
  0x41   : > { %904 = vmatpush3.msra.mxu1 %v399_v37  ;;  %889 = vmatpush3.msra.mxu0 %v397_v39 }
  0x42   : > { %905 = vmatprep.subr.mxu1 %v1102_v31  ;;  %890 = vmatprep.subr.mxu0 %v1102_v31 }
  0x43   : > { %388 = vmax.xlane.f32.xlu1 %v325_v24  ;;  %906 = vmatpush3.msra.mxu1 %v398_v38 }
  0x44   : > { %360 = vadd.xlane.f32.xlu0 %v303_v25  ;;  %891 = vmatpush3.msra.mxu0 %v396_v40  ;;  %v464_v25 = vsub.s32 %v461_v12, %v416_v50  ;;  %v404_v50 = vld [vmem:[%s1348_s2] sm:$0xf] }
  0x45   : > { %907 = vmatprep.subr.mxu1 %v1102_v31  ;;  %914 = vmatprep.subr.mxu0 %v1102_v31 }
  0x46   : > { %908 = vmatpush3.msra.mxu1 %v397_v39 }
  0x47   : > { %390 = vmax.xlane.f32.xlu1 %v326_v28  ;;  %909 = vmatprep.subr.mxu1 %v1102_v31 }
  0x48   : > { %362 = vadd.xlane.f32.xlu0 %v304_v29  ;;  %910 = vmatpush3.msra.mxu1 %v396_v40 }
  0x4b   : > { %394 = vmax.xlane.f32.xlu1 %v328_v30 }
  0x4c   : > { %392 = vmax.xlane.f32.xlu0 %v327_v33 }
  0xb8   : > { %v353_v41 = vpop.xlane.xlu1 %352 }
  0xb9   : > { %v349_v42 = vpop.xlane.xlu0 %348  ;;  %v366_v0 = vmul.f32 0.00390625, %v353_v41 }
  0xba   : > { %v364_v57 = vmul.f32 0.00390625, %v349_v42 }
  0xbb   : > { %v430_v13 = vrot.slane %v366_v0, %v429_v63 }
  0xbc   : > { %v355_v44 = vpop.xlane.xlu1 %354  ;;  %v418_v3 = vrot.slane %v364_v57, %v417_v56 }
  0xbd   : > { %v351_v45 = vpop.xlane.xlu0 %350  ;;  %v367_v5 = vmul.f32 0.00390625, %v355_v44 }
  0xbe   : > { %v365_v52 = vmul.f32 0.00390625, %v351_v45 }
  0xbf   : > { %v437_v16 = vrot.slane %v367_v5, %v436_v4 }
  0xc0   : > { %v383_v48 = vpop.xlane.xlu1 %382  ;;  %v423_v60 = vrot.slane %v365_v52, %v422_v51 }
  0xc1   : > { %v381_v49 = vpop.xlane.xlu0 %380  ;;  %v557_v18 = vrot.slane %v383_v48, %v422_v51 }
  0xc2   : > { %v425_v8 = vsel %vm424_vm1, %v423_v60, %v418_v3  ;;  %v553_v19 = vrot.slane %v381_v49, %v417_v56 }
  0xc3   : > { %v432_v20 = vsel %vm431_vm2, %v430_v13, %v425_v8 }
  0xc4   : > { %v385_v53 = vpop.xlane.xlu1 %384  ;;  %v439_v29 = vsel %vm438_vm3, %v437_v16, %v432_v20  ;;  %v558_v33 = vsel %vm424_vm1, %v557_v18, %v553_v19 }
  0xc5   : > { %v357_v55 = vpop.xlane.xlu0 %356  ;;  %v562_v22 = vrot.slane %v385_v53, %v429_v63 }
  0xc6   : > { %v368_v7 = vmul.f32 0.00390625, %v357_v55 }
  0xc7   : > { %v563_v36 = vsel %vm431_vm2, %v562_v22, %v558_v33 }
  0xc8   : > { %v387_v61 = vpop.xlane.xlu1 %386  ;;  %v444_v21 = vrot.slane %v368_v7, %v443_v6 }
  0xc9   : > { %v359_v1 = vpop.xlane.xlu0 %358  ;;  %v567_v26 = vrot.slane %v387_v61, %v436_v4 }
  0xca   : > { %v369_v10 = vmul.f32 0.00390625, %v359_v1  ;;  %v446_v34 = vsel %vm445_vm4, %v444_v21, %v439_v29 }
  0xcb   : > { %v568_v40 = vsel %vm438_vm3, %v567_v26, %v563_v36 }
  0xcc   : > { %v389_v11 = vpop.xlane.xlu1 %388  ;;  %v451_v23 = vrot.slane %v369_v10, %v450_v9 }
  0xcd   : > { %v361_v15 = vpop.xlane.xlu0 %360  ;;  %v572_v30 = vrot.slane %v389_v11, %v443_v6 }
  0xce   : > { %v370_v17 = vmul.f32 0.00390625, %v361_v15  ;;  %v453_v37 = vsel %vm452_vm5, %v451_v23, %v446_v34 }
  0xcf   : > { %v573_v44 = vsel %vm445_vm4, %v572_v30, %v568_v40 }
  0xd0   : > { %v391_v24 = vpop.xlane.xlu1 %390  ;;  %v458_v27 = vrot.slane %v370_v17, %v457_v14 }
  0xd1   : > { %v363_v28 = vpop.xlane.xlu0 %362  ;;  %v577_v35 = vrot.slane %v391_v24, %v450_v9 }
  0xd2   : > { %v371_v32 = vmul.f32 0.00390625, %v363_v28  ;;  %v460_v43 = vsel %vm459_vm6, %v458_v27, %v453_v37 }
  0xd3   : > { %v578_v47 = vsel %vm452_vm5, %v577_v35, %v573_v44 }
  0xd4   : > { %v465_v38 = vrot.slane %v371_v32, %v464_v25  ;;  %v395_v39 = vpop.xlane.xlu1 %394 }
  0xd5   : > { %v393_v41 = vpop.xlane.xlu0 %392  ;;  %v587_v42 = vrot.slane %v395_v39, %v464_v25 }
  0xd6   : > { %v582_v45 = vrot.slane %v393_v41, %v457_v14  ;;  %v467_v46 = vsel %vm466_vm7, %v465_v38, %v460_v43 }
  0xd7   : > { %893 = vmatmul.mubr.msk.f32.vlgmr.msra.gmra.mxu0 %vm468_vm8, %v467_v46 }
  0xd8   : > { %v583_v48 = vsel %vm459_vm6, %v582_v45, %v578_v47  ;;  %916 = vmatprep.mubr.msk.f32.mxu0 %vm1103_vm0, %v1102_v31  ;;  %915 = vmatpush3.msk.msra.mxu0 %vm667_vm9, %v404_v50 }
  0xd9   : > { %v588_v49 = vsel %vm466_vm7, %v587_v42, %v583_v48 }
  0xda   : > { %912 = vmatmul.mubr.msk.f32.vlgmr.msra.gmra.mxu1 %vm468_vm8, %v588_v49 }
 0x197   : > { %v537_v51 = vpop.f32.mrf.mxu0 }
 0x198   : > { %v541_v54 = vmax.f32 %v537_v51, 0.0 }
 0x199   : > { %v894_v52 = vpop.f32.mrf.mxu0 }
 0x19a   : > { %v657_v53 = vpop.f32.mrf.mxu1 }
 0x19b   : > { %v661_v55 = vmax.f32 %v657_v53, 0.0 }
 0x19c   : > { %v913_v56 = vpop.f32.mrf.mxu1 }
 0x19d   : > { %v662_v57 = vadd.f32 %v661_v55, %v541_v54 }
 0x19f   : > { %917 = vmatmul.mubr.msk.f32.vlgmr.msra.gmra.mxu0 %vm663_vm10, %v662_v57 }
 0x25f   : > { %v737_v31 = vpop.f32.mrf.mxu0 }
 0x260   : > { %v741_v58 = vsub.f32 0.0, %v737_v31 }
 0x261   : > { %v918_v59 = vpop.f32.mrf.mxu0 }
 0x262   : > { %v742_v60 = vmul.f32 1.442695, %v741_v58 }
 0x264   : > { %985 = vpow2.f32 %v742_v60 }
 0x271   : > { %v986_v61 = vpop.eup %985 }
 0x272   : > { %v744_v62 = vadd.f32 1.0, %v986_v61 }
 0x274   : > { %987 = vrcp.f32 %v744_v62 }
 0x281   : > { %v988_v63 = vpop.eup %987 }
 0x282   : > { %748 = vst.msk [vmem:[%s203_s7] sm:$0x1] %vm747_vm11, %v988_v63 }
 0x283   : > { %1030 = shalt.err (!%p1027_p6)
}
 0x284   : > { %s1031_s23 = scalar_lea.hbm %s1304_s11, 16  ;;  %s1035_s30 = scalar_lea.hbm %s1349_s3, 32 }
 0x285   : > { %p1032_p7 = scmp.ne.s32.totalorder %s1304_s11, %s1031_s23  ;;  %p1036_p13 = scmp.lt.s32.totalorder %s1304_s11, %s1349_s3 }
 0x286   : > { %p1037_p2 = scmp.lt.s32.totalorder %s1035_s30, %s1031_s23 }
 0x287   : > { %p1033_p10 = pnand %p1032_p7, %p1176_p9 }
 0x288   : > { %p1038_p8 = por %p1037_p2, %p1036_p13 }
 0x289   : > { %p1034_p4 = pneg %p1033_p10 }
 0x28b   : > { %p1039_p12 = pnand %p1038_p8, %p1034_p4 }
 0x28d   : > { %1042 = shalt.err (!%p1039_p12)
}
 0x28e   : > { %921 = dma.vmem_to_hbm [thread:$0]  (%p1176_p9), %s763_s8, 16, %s1304_s11, %s750_s18  }
 0x28f PF: > { %s774_s5 = sand.u32 1, %s1077_s12   ;;  %p1355_p0 = scmp.ge.s32.totalorder %s1097_s17, 2 }
 0x290   : > { %s775_s6 = scalar_lea.sflag [#allocation6], %s774_s5 }
 0x291   : > { %p928_p1 = pnand %p1355_p0, %p1183_p11 }
 0x293   : > { %p929_p3 = pneg %p928_p1 }
 0x295   : > { %1072 = dma.done.wait (%p929_p3), %s775_s6, 16  }
 0x296   : > { %1074 = vsyncadd (%p929_p3), %s775_s6, 4294967280  ;;  %s19_s17 = sadd.s32 1, %s1097_s17   ;;  %s1356_s12 = smov %s1081_s13 }
 0x297   : > { %p16_p5 = scmp.ge.s32.totalorder %s19_s17, 4   ;;  %s1357_s13 = smov %s1085_s14 }
 0x298   : > { %s1358_s14 = smov %s1181_s26  ;;  %s1359_s15 = smov %s1093_s16 }
 0x299   : > { %s1360_s16 = smov %s1362_s20  ;;  %18 = sbr.rel (!%p16_p5) target bundleno = 6 (0x6), region = 85 }
 0x29e   :  { %779 = vsyncpa [#allocation5], 1 }
 0x29f   :  { %781 = vsyncpa [#allocation5 + $0x1], 1 }
 0x2a0   :  { %782 = vsyncpa [#allocation6], 1 }
 0x2a1   :  { %784 = vsyncpa [#allocation6 + $0x1], 1 }

</bundles_post_ra>
